<compile_context>
chip_gen: v5e
topology: v5e:2x2
jax: 0.10.0
libtpu: 0.0.40
codegen_flags: <defaults>
</compile_context>

<pallas_src>
import functools

import jax
import jax.numpy as jnp
from jax.experimental import pallas as pl
from jax.experimental.pallas import tpu as pltpu

LEAKY_SLOPE = 0.01
BN_EPS = 1e-5


def _round_up(x, m):
    return ((x + m - 1) // m) * m


# ---------------------------------------------------------------------------
# Pass 1: conv-as-matmul (im2col tile) -> per-tile partial channel sum / sumsq.
# Grid = (cdiv(M, TM),), fully "parallel" (each step writes its own stats row).
# ---------------------------------------------------------------------------
def _conv_stats_kernel(p_ref, w_ref, sum_ref, ssq_ref, *, tm, m_total):
    i = pl.program_id(0)

    # MXU matmul: bf16 (or f32) operands, f32 accumulation.
    y = jnp.dot(p_ref[...], w_ref[...], preferred_element_type=jnp.float32)

    # Mask rows past the true M (the tail tile reads unspecified data); use
    # where (not multiply) so possible NaNs in the dead rows don't propagate.
    row = jax.lax.broadcasted_iota(jnp.int32, (tm, 1), 0) + i * tm
    y = jnp.where(row < m_total, y, 0.0)

    # Sublane-parallel partial sums: (TM, C) -> (TM//8, 8, C) is a layout-free
    # reshape; the axis-0 reduction is plain VPU adds across vregs. The final
    # 8 -> 1 (and tile -> total) reduction is a tiny XLA op outside the kernel.
    y8 = y.reshape(tm // 8, 8, y.shape[-1])
    sum_ref[...] = jnp.sum(y8, axis=0)
    ssq_ref[...] = jnp.sum(y8 * y8, axis=0)


# ---------------------------------------------------------------------------
# Pass 2: recompute the conv matmul, apply BN folded to one FMA + LeakyReLU.
# Grid = (cdiv(M, TM),), fully "parallel"; tail-tile OOB writes are dropped.
# ---------------------------------------------------------------------------
def _conv_bn_lrelu_kernel(p_ref, w_ref, scale_ref, offset_ref, o_ref):
    y = jnp.dot(p_ref[...], w_ref[...], preferred_element_type=jnp.float32)
    z = y * scale_ref[...] + offset_ref[...]
    o_ref[...] = jnp.where(z >= 0, z, LEAKY_SLOPE * z).astype(o_ref.dtype)


def _im2col_nhwc(x_nhwc, k=3, stride=2, pad=1):
    N, H, W, C = x_nhwc.shape
    xp = jnp.pad(x_nhwc, ((0, 0), (pad, pad), (pad, pad), (0, 0)))
    Hout = (H + 2 * pad - k) // stride + 1
    Wout = (W + 2 * pad - k) // stride + 1
    taps = []
    for dh in range(k):
        for dw in range(k):
            taps.append(
                xp[:, dh: dh + stride * Hout: stride, dw: dw + stride * Wout: stride, :]
            )
    # (N, Hout, Wout, 9, C) -> (M, 9*C), tap-major / channel-minor
    p = jnp.stack(taps, axis=3)
    return p.reshape(N * Hout * Wout, k * k * C), Hout, Wout


@functools.partial(jax.jit,
                   static_argnames=("downsample", "mxu_dtype", "out_dtype", "tile_m"))
def conv_block_forward(x_nchw, w_oihw, bias, gamma, beta, *, downsample=True,
                       mxu_dtype=jnp.bfloat16, out_dtype=None, tile_m=1024):
    """Forward of conv_block. x_nchw: (N, Cin, H, W) -> (N, Cout, Hout, Wout)."""
    del bias  # exactly cancelled by the training-mode BatchNorm mean subtraction
    if out_dtype is None:
        out_dtype = mxu_dtype

    stride = 2 if downsample else 1
    N, Cin, H, W = x_nchw.shape
    Cout = w_oihw.shape[0]

    # NCHW -> NHWC (cast first so the transpose moves half the bytes when bf16),
    # then im2col in XLA.  K = 9*Cin is NOT padded in HBM (feedback item 1).
    x_nhwc = jnp.transpose(x_nchw.astype(mxu_dtype), (0, 2, 3, 1))
    patches, Hout, Wout = _im2col_nhwc(x_nhwc, k=3, stride=stride, pad=1)
    M, K = patches.shape

    # (Cout, Cin, 3, 3) -> (3, 3, Cin, Cout) -> (9*Cin, Cout)  [matches patch order]
    w_mat = jnp.transpose(w_oihw, (2, 3, 1, 0)).reshape(K, Cout).astype(mxu_dtype)
    Cpad = _round_up(Cout, 128)            # lane-dense output / MXU-friendly N
    if Cpad != Cout:
        w_mat = jnp.pad(w_mat, ((0, 0), (0, Cpad - Cout)))

    TM = min(tile_m, _round_up(M, 8))      # multiple of 8 sublanes
    n_tiles = pl.cdiv(M, TM)               # no M padding in HBM (feedback item 8)

    itemsize = jnp.dtype(mxu_dtype).itemsize
    out_itemsize = jnp.dtype(out_dtype).itemsize
    # Per-grid-step VMEM footprint (double-buffered in/out blocks) with headroom;
    # cap well below v7x's 64 MiB per-TC VMEM (feedback item 5).
    step_bytes = (2 * TM * K * itemsize            # patch tiles (double-buffered)
                  + 2 * K * Cpad * itemsize        # weights (constant block index;
                                                   #  pl.Buffered(1) would halve this)
                  + 2 * TM * Cpad * max(4, out_itemsize)
                  + 4 * 8 * Cpad * 4)              # stats / scale / offset tiles
    vmem_limit = int(min(48 * 2**20, max(16 * 2**20, 4 * step_bytes)))

    # ---------------- pass 1: per-tile channel statistics ------------------
    sums, ssqs = pl.pallas_call(
        functools.partial(_conv_stats_kernel, tm=TM, m_total=M),
        out_shape=(
            jax.ShapeDtypeStruct((n_tiles, 8, Cpad), jnp.float32),
            jax.ShapeDtypeStruct((n_tiles, 8, Cpad), jnp.float32),
        ),
        grid=(n_tiles,),
        in_specs=[
            pl.BlockSpec((TM, K), lambda i: (i, 0)),       # full-extent K block
            pl.BlockSpec((K, Cpad), lambda i: (0, 0)),     # weights stay resident
        ],
        out_specs=(
            pl.BlockSpec((None, 8, Cpad), lambda i: (i, 0, 0)),
            pl.BlockSpec((None, 8, Cpad), lambda i: (i, 0, 0)),
        ),
        compiler_params=pltpu.CompilerParams(
            dimension_semantics=("parallel",),             # megacore on v7x
            vmem_limit_bytes=vmem_limit,
        ),
    )(patches, w_mat)

    # ------------- per-channel BN affine (tiny Cout-sized math) ------------
    inv_m = 1.0 / float(M)                 # real M; masked rows contribute 0 exactly
    ch_sum = jnp.sum(sums, axis=(0, 1)).reshape(1, Cpad)
    ch_ssq = jnp.sum(ssqs, axis=(0, 1)).reshape(1, Cpad)
    mean = ch_sum * inv_m
    var = jnp.maximum(ch_ssq * inv_m - mean * mean, 0.0)   # biased (training) var
    gamma_p = jnp.pad(gamma.astype(jnp.float32).reshape(1, Cout),
                      ((0, 0), (0, Cpad - Cout)))
    beta_p = jnp.pad(beta.astype(jnp.float32).reshape(1, Cout),
                     ((0, 0), (0, Cpad - Cout)))
    scale = gamma_p * jax.lax.rsqrt(var + BN_EPS)
    offset = beta_p - mean * scale

    # ------------- pass 2: recompute conv, fused BN + LeakyReLU ------------
    out_flat = pl.pallas_call(
        _conv_bn_lrelu_kernel,
        out_shape=jax.ShapeDtypeStruct((M, Cpad), out_dtype),
        grid=(n_tiles,),
        in_specs=[
            pl.BlockSpec((TM, K), lambda i: (i, 0)),
            pl.BlockSpec((K, Cpad), lambda i: (0, 0)),
            pl.BlockSpec((1, Cpad), lambda i: (0, 0)),
            pl.BlockSpec((1, Cpad), lambda i: (0, 0)),
        ],
        out_specs=pl.BlockSpec((TM, Cpad), lambda i: (i, 0)),
        compiler_params=pltpu.CompilerParams(
            dimension_semantics=("parallel",),
            vmem_limit_bytes=vmem_limit,
        ),
    )(patches, w_mat, scale, offset)

    # Trailing layout fixup done by XLA (on narrow out_dtype -> half the bytes).
    out = out_flat[:, :Cout].reshape(N, Hout, Wout, Cout)
    return jnp.transpose(out, (0, 3, 1, 2))   # back to NCHW


def _reference_forward(x_nchw, w_oihw, bias, gamma, beta, *, downsample=True):
    """Pure-JAX reference mirroring the PyTorch module (training-mode BN)."""
    stride = 2 if downsample else 1
    y = jax.lax.conv_general_dilated(
        x_nchw.astype(jnp.float32),
        w_oihw.astype(jnp.float32),
        window_strides=(stride, stride),
        padding=((1, 1), (1, 1)),
        dimension_numbers=("NCHW", "OIHW", "NCHW"),
    )
    y = y + bias.reshape(1, -1, 1, 1)
    mean = jnp.mean(y, axis=(0, 2, 3), keepdims=True)
    var = jnp.mean((y - mean) ** 2, axis=(0, 2, 3), keepdims=True)
    y_hat = (y - mean) / jnp.sqrt(var + BN_EPS)
    z = gamma.reshape(1, -1, 1, 1) * y_hat + beta.reshape(1, -1, 1, 1)
    return jnp.where(z >= 0, z, LEAKY_SLOPE * z)


if __name__ == "__main__":
    key = jax.random.PRNGKey(0)
    N, Cin, H, W = 2, 4, 16, 16
    Cout = 8

    k_x, k_w, k_b = jax.random.split(key, 3)
    x = jax.random.normal(k_x, (N, Cin, H, W), dtype=jnp.float32)

    # Deterministic parameter init (shapes follow nn.Conv2d / nn.BatchNorm2d)
    fan_in = Cin * 3 * 3
    bound = 1.0 / (fan_in ** 0.5)
    w = jax.random.uniform(k_w, (Cout, Cin, 3, 3), jnp.float32, -bound, bound)
    bias = jax.random.uniform(k_b, (Cout,), jnp.float32, -bound, bound)
    gamma = jnp.ones((Cout,), jnp.float32)   # BatchNorm2d default weight
    beta = jnp.zeros((Cout,), jnp.float32)   # BatchNorm2d default bias

    ref = _reference_forward(x, w, bias, gamma, beta, downsample=True)

    # Structural / exact check: f32 MXU operands + f32 output (tight tolerance).
    out_f32 = conv_block_forward(x, w, bias, gamma, beta, downsample=True,
                                 mxu_dtype=jnp.float32, out_dtype=jnp.float32)
    out_f32 = jax.block_until_ready(out_f32)
    assert out_f32.shape == (N, Cout, H // 2, W // 2), out_f32.shape
    assert jnp.allclose(out_f32, ref, atol=1e-4, rtol=1e-4), \
        float(jnp.max(jnp.abs(out_f32 - ref)))

    # Production path: bf16 MXU operands, f32 accumulation, bf16 store.
    out_bf16 = conv_block_forward(x, w, bias, gamma, beta, downsample=True)
    out_bf16 = jax.block_until_ready(out_bf16)
    assert out_bf16.shape == (N, Cout, H // 2, W // 2), out_bf16.shape
    assert jnp.allclose(out_bf16.astype(jnp.float32), ref, atol=5e-2, rtol=5e-2), \
        float(jnp.max(jnp.abs(out_bf16.astype(jnp.float32) - ref)))

    print("KERNEL_OK")
</pallas_src>

<mosaic_0001>
module attributes {stable_mosaic.version = 11 : i64} {
  func.func @_conv_stats_kernel(%arg0: i32, %arg1: memref<128x36xf32, #tpu.memory_space<vmem>>, %arg2: memref<36x128xf32, #tpu.memory_space<vmem>>, %arg3: memref<1x8x128xf32, #tpu.memory_space<vmem>>, %arg4: memref<1x8x128xf32, #tpu.memory_space<vmem>>) attributes {dimension_semantics = [#tpu.dimension_semantics<parallel>], iteration_bounds = array<i64: 1>, scalar_prefetch = 0 : i64, scratch_operands = 0 : i64, tpu.core_type = #tpu.core_type<tc>, window_params = [{transform_indices = @transform_0, window_bounds = array<i64: 128, 36>}, {pipeline_mode = #tpu.pipeline_mode<synchronous>, transform_indices = @transform_1, window_bounds = array<i64: 36, 128>}, {transform_indices = @transform_2, window_bounds = array<i64: 1, 8, 128>}, {transform_indices = @transform_3, window_bounds = array<i64: 1, 8, 128>}]} {
    %c0 = arith.constant 0 : index
    %c0_0 = arith.constant 0 : index
    %0 = vector.load %arg1[%c0, %c0_0] : memref<128x36xf32, #tpu.memory_space<vmem>>, vector<128x36xf32>
    %c0_1 = arith.constant 0 : index
    %c0_2 = arith.constant 0 : index
    %1 = vector.load %arg2[%c0_1, %c0_2] : memref<36x128xf32, #tpu.memory_space<vmem>>, vector<36x128xf32>
    %cst = arith.constant dense<0.000000e+00> : vector<128x128xf32>
    %2 = tpu.matmul %0, %1, %cst {dimension_numbers = #tpu.dot_dimension_numbers<[1], [0], [0], [1], [0, 0, 1, 1], [], []>} : vector<128x36xf32>, vector<36x128xf32>, vector<128x128xf32> -> vector<128x128xf32>
    %3 = tpu.iota {dimensions = array<i32: 0>} : vector<128x1xi32>
    %c128_i32 = arith.constant 128 : i32
    %4 = arith.muli %arg0, %c128_i32 : i32
    %5 = vector.broadcast %4 : i32 to vector<128x1xi32>
    %6 = arith.addi %3, %5 : vector<128x1xi32>
    %c128_i32_3 = arith.constant 128 : i32
    %7 = vector.broadcast %c128_i32_3 : i32 to vector<128x1xi32>
    %8 = arith.cmpi slt, %6, %7 : vector<128x1xi32>
    %cst_4 = arith.constant 0.000000e+00 : f32
    %9 = vector.shape_cast %8 : vector<128x1xi1> to vector<128x1xi1>
    %10 = vector.broadcast %9 : vector<128x1xi1> to vector<128x128xi1>
    %11 = vector.broadcast %cst_4 : f32 to vector<128x128xf32>
    %12 = arith.select %10, %2, %11 : vector<128x128xi1>, vector<128x128xf32>
    %13 = vector.shape_cast %12 : vector<128x128xf32> to vector<16x8x128xf32>
    %cst_5 = arith.constant dense<0.000000e+00> : vector<8x128xf32>
    %14 = vector.multi_reduction <add>, %13, %cst_5 [0] : vector<16x8x128xf32> to vector<8x128xf32>
    %c0_6 = arith.constant 0 : index
    %c0_7 = arith.constant 0 : index
    %c0_8 = arith.constant 0 : index
    %15 = vector.load %arg3[%c0_6, %c0_7, %c0_8] : memref<1x8x128xf32, #tpu.memory_space<vmem>>, vector<1x8x128xf32>
    %16 = vector.shape_cast %15 : vector<1x8x128xf32> to vector<8x128xf32>
    %17 = vector.shape_cast %14 : vector<8x128xf32> to vector<1x8x128xf32>
    tpu.vector_store %arg3[%c0_6, %c0_7, %c0_8], %17 {strides = array<i32>} : memref<1x8x128xf32, #tpu.memory_space<vmem>>, vector<1x8x128xf32>,
    %18 = arith.mulf %13, %13 : vector<16x8x128xf32>
    %cst_9 = arith.constant dense<0.000000e+00> : vector<8x128xf32>
    %19 = vector.multi_reduction <add>, %18, %cst_9 [0] : vector<16x8x128xf32> to vector<8x128xf32>
    %c0_10 = arith.constant 0 : index
    %c0_11 = arith.constant 0 : index
    %c0_12 = arith.constant 0 : index
    %20 = vector.load %arg4[%c0_10, %c0_11, %c0_12] : memref<1x8x128xf32, #tpu.memory_space<vmem>>, vector<1x8x128xf32>
    %21 = vector.shape_cast %20 : vector<1x8x128xf32> to vector<8x128xf32>
    %22 = vector.shape_cast %19 : vector<8x128xf32> to vector<1x8x128xf32>
    tpu.vector_store %arg4[%c0_10, %c0_11, %c0_12], %22 {strides = array<i32>} : memref<1x8x128xf32, #tpu.memory_space<vmem>>, vector<1x8x128xf32>,
    return
  }
  func.func @transform_0(%arg0: i32) -> (i32, i32) {
    %c0_i32 = arith.constant 0 : i32
    %c0_i32_0 = arith.constant 0 : i32
    return %arg0, %c0_i32 : i32, i32
  }
  func.func @transform_1(%arg0: i32) -> (i32, i32) {
    %c0_i32 = arith.constant 0 : i32
    %c0_i32_0 = arith.constant 0 : i32
    %c0_i32_1 = arith.constant 0 : i32
    return %c0_i32, %c0_i32_0 : i32, i32
  }
  func.func @transform_2(%arg0: i32) -> (i32, i32, i32) {
    %c0_i32 = arith.constant 0 : i32
    %c0_i32_0 = arith.constant 0 : i32
    %c0_i32_1 = arith.constant 0 : i32
    return %arg0, %c0_i32, %c0_i32_0 : i32, i32, i32
  }
  func.func @transform_3(%arg0: i32) -> (i32, i32, i32) {
    %c0_i32 = arith.constant 0 : i32
    %c0_i32_0 = arith.constant 0 : i32
    %c0_i32_1 = arith.constant 0 : i32
    return %arg0, %c0_i32, %c0_i32_0 : i32, i32, i32
  }
}

module attributes {stable_mosaic.version = 11 : i64} {
  func.func @_conv_bn_lrelu_kernel(%arg0: i32, %arg1: memref<128x36xf32, #tpu.memory_space<vmem>>, %arg2: memref<36x128xf32, #tpu.memory_space<vmem>>, %arg3: memref<1x128xf32, #tpu.memory_space<vmem>>, %arg4: memref<1x128xf32, #tpu.memory_space<vmem>>, %arg5: memref<128x128xf32, #tpu.memory_space<vmem>>) attributes {dimension_semantics = [#tpu.dimension_semantics<parallel>], iteration_bounds = array<i64: 1>, scalar_prefetch = 0 : i64, scratch_operands = 0 : i64, tpu.core_type = #tpu.core_type<tc>, window_params = [{transform_indices = @transform_0, window_bounds = array<i64: 128, 36>}, {pipeline_mode = #tpu.pipeline_mode<synchronous>, transform_indices = @transform_1, window_bounds = array<i64: 36, 128>}, {pipeline_mode = #tpu.pipeline_mode<synchronous>, transform_indices = @transform_2, window_bounds = array<i64: 1, 128>}, {pipeline_mode = #tpu.pipeline_mode<synchronous>, transform_indices = @transform_3, window_bounds = array<i64: 1, 128>}, {transform_indices = @transform_4, window_bounds = array<i64: 128, 128>}]} {
    %c0 = arith.constant 0 : index
    %c0_0 = arith.constant 0 : index
    %0 = vector.load %arg1[%c0, %c0_0] : memref<128x36xf32, #tpu.memory_space<vmem>>, vector<128x36xf32>
    %c0_1 = arith.constant 0 : index
    %c0_2 = arith.constant 0 : index
    %1 = vector.load %arg2[%c0_1, %c0_2] : memref<36x128xf32, #tpu.memory_space<vmem>>, vector<36x128xf32>
    %cst = arith.constant dense<0.000000e+00> : vector<128x128xf32>
    %2 = tpu.matmul %0, %1, %cst {dimension_numbers = #tpu.dot_dimension_numbers<[1], [0], [0], [1], [0, 0, 1, 1], [], []>} : vector<128x36xf32>, vector<36x128xf32>, vector<128x128xf32> -> vector<128x128xf32>
    %c0_3 = arith.constant 0 : index
    %c0_4 = arith.constant 0 : index
    %3 = vector.load %arg3[%c0_3, %c0_4] : memref<1x128xf32, #tpu.memory_space<vmem>>, vector<1x128xf32>
    %4 = vector.broadcast %3 : vector<1x128xf32> to vector<128x128xf32>
    %5 = arith.mulf %2, %4 : vector<128x128xf32>
    %c0_5 = arith.constant 0 : index
    %c0_6 = arith.constant 0 : index
    %6 = vector.load %arg4[%c0_5, %c0_6] : memref<1x128xf32, #tpu.memory_space<vmem>>, vector<1x128xf32>
    %7 = vector.broadcast %6 : vector<1x128xf32> to vector<128x128xf32>
    %8 = arith.addf %5, %7 : vector<128x128xf32>
    %cst_7 = arith.constant 0.000000e+00 : f32
    %9 = vector.broadcast %cst_7 : f32 to vector<128x128xf32>
    %10 = arith.cmpf oge, %8, %9 : vector<128x128xf32>
    %cst_8 = arith.constant 0.00999999977 : f32
    %11 = vector.broadcast %cst_8 : f32 to vector<128x128xf32>
    %12 = arith.mulf %11, %8 : vector<128x128xf32>
    %13 = arith.select %10, %8, %12 : vector<128x128xi1>, vector<128x128xf32>
    %c0_9 = arith.constant 0 : index
    %c0_10 = arith.constant 0 : index
    %14 = vector.load %arg5[%c0_9, %c0_10] : memref<128x128xf32, #tpu.memory_space<vmem>>, vector<128x128xf32>
    tpu.vector_store %arg5[%c0_9, %c0_10], %13 {strides = array<i32>} : memref<128x128xf32, #tpu.memory_space<vmem>>, vector<128x128xf32>,
    return
  }
  func.func @transform_0(%arg0: i32) -> (i32, i32) {
    %c0_i32 = arith.constant 0 : i32
    %c0_i32_0 = arith.constant 0 : i32
    return %arg0, %c0_i32 : i32, i32
  }
  func.func @transform_1(%arg0: i32) -> (i32, i32) {
    %c0_i32 = arith.constant 0 : i32
    %c0_i32_0 = arith.constant 0 : i32
    %c0_i32_1 = arith.constant 0 : i32
    return %c0_i32, %c0_i32_0 : i32, i32
  }
  func.func @transform_2(%arg0: i32) -> (i32, i32) {
    %c0_i32 = arith.constant 0 : i32
    %c0_i32_0 = arith.constant 0 : i32
    %c0_i32_1 = arith.constant 0 : i32
    return %c0_i32, %c0_i32_0 : i32, i32
  }
  func.func @transform_3(%arg0: i32) -> (i32, i32) {
    %c0_i32 = arith.constant 0 : i32
    %c0_i32_0 = arith.constant 0 : i32
    %c0_i32_1 = arith.constant 0 : i32
    return %c0_i32, %c0_i32_0 : i32, i32
  }
  func.func @transform_4(%arg0: i32) -> (i32, i32) {
    %c0_i32 = arith.constant 0 : i32
    %c0_i32_0 = arith.constant 0 : i32
    return %arg0, %c0_i32 : i32, i32
  }
}

</mosaic_0001>

<bundles_post_ra>
// kernel: conv_block_forward.3
= control target key start
LH: loop header
LB: loop body
LE: loop exit
PB: predicated region body
PF: predicated region fallthrough
CT: control target
= control target key end

     0   :  { %vm87_vm0 = vcmask 1043456   ;;  %vm38_vm1 = vcmask 293888   ;;  %s492_s1 = inlined_call_operand.vmem [shape: f32[36,128], index: 1, kind: input, shape index: {}]   ;;  %s493_s0 = inlined_call_operand.vmem [shape: f32[128,36], index: 0, kind: input, shape index: {}]   ;;  %s494_s2 = inlined_call_operand.vmem [shape: f32[1,128], index: 2, kind: input, shape index: {}]   ;;  %s495_s3 = inlined_call_operand.vmem [shape: f32[1,128], index: 3, kind: input, shape index: {}]   ;;  %s496_s4 = inlined_call_operand.vmem [shape: f32[128,128], index: 4, kind: output, shape index: {}]  }
   0x1   :  { %v37_v0 = vld [vmem:[%s492_s1 + $0x20] sm:$0xf]  ;;  %v36_v1 = vld [vmem:[%s492_s1 + $0x18] sm:$0xff]  ;;  %v35_v2 = vld [vmem:[%s492_s1 + $0x10] sm:$0xff] }
   0x2   :  { %282 = vmatpush.msk.msra.mxu2 %vm87_vm0, %v37_v0  ;;  %283 = vmatpush.msk.msra.mxu3 %vm87_vm0, %v37_v0  ;;  %v34_v3 = vld [vmem:[%s492_s1 + $0x8] sm:$0xff]  ;;  %v33_v4 = vld [vmem:[%s492_s1] sm:$0xff]  ;;  %v27_v13 = vld [vmem:[%s493_s0 + $0x50] sm:$0xff] }
   0x3   :  { %264 = vmatpush.msk.msra.mxu0 %vm87_vm0, %v37_v0  ;;  %281 = vmatpush.msk.msra.mxu1 %vm87_vm0, %v37_v0  ;;  %v25_v5 = vld [vmem:[%s493_s0 + $0x40] sm:$0xff]  ;;  %v26_v9 = vld [vmem:[%s493_s0 + $0x48] sm:$0xff]  ;;  %v31_v14 = vld [vmem:[%s493_s0 + $0x70] sm:$0xff] }
   0x4   :  { %285 = vmatpush.msra.mxu2 %v36_v1  ;;  %286 = vmatpush.msra.mxu3 %v36_v1  ;;  %v29_v6 = vld [vmem:[%s493_s0 + $0x60] sm:$0xff]  ;;  %v30_v10 = vld [vmem:[%s493_s0 + $0x68] sm:$0xff]  ;;  %v19_v15 = vld [vmem:[%s493_s0 + $0x10] sm:$0xff] }
   0x5   :  { %103 = vmatpush.msra.mxu0 %v36_v1  ;;  %284 = vmatpush.msra.mxu1 %v36_v1  ;;  %v17_v7 = vld [vmem:[%s493_s0] sm:$0xff]  ;;  %v18_v11 = vld [vmem:[%s493_s0 + $0x8] sm:$0xff]  ;;  %v23_v16 = vld [vmem:[%s493_s0 + $0x30] sm:$0xff] }
   0x6   :  { %288 = vmatpush.msra.mxu2 %v35_v2  ;;  %289 = vmatpush.msra.mxu3 %v35_v2  ;;  %v21_v8 = vld [vmem:[%s493_s0 + $0x20] sm:$0xff]  ;;  %v22_v12 = vld [vmem:[%s493_s0 + $0x28] sm:$0xff]  ;;  %v28_v17 = vld [vmem:[%s493_s0 + $0x58] sm:$0xff] }
   0x7   :  { %104 = vmatpush.msra.mxu0 %v35_v2  ;;  %287 = vmatpush.msra.mxu1 %v35_v2  ;;  %v32_v18 = vld [vmem:[%s493_s0 + $0x78] sm:$0xff]  ;;  %v405_v21 = vld [vmem:[%s494_s2] ss:$0 sm:$0xff] }
   0x8   :  { %291 = vmatpush.msra.mxu2 %v34_v3  ;;  %292 = vmatpush.msra.mxu3 %v34_v3  ;;  %v20_v19 = vld [vmem:[%s493_s0 + $0x18] sm:$0xff]  ;;  %v410_v22 = vld [vmem:[%s495_s3] ss:$0 sm:$0xff] }
   0x9   :  { %105 = vmatpush.msra.mxu0 %v34_v3  ;;  %290 = vmatpush.msra.mxu1 %v34_v3  ;;  %v24_v20 = vld [vmem:[%s493_s0 + $0x38] sm:$0xff] }
   0xa   :  { %294 = vmatpush.msra.mxu2 %v33_v4  ;;  %295 = vmatpush.msra.mxu3 %v33_v4 }
   0xb   :  { %273 = vmatmul.msk.f32.vlgmr.msra.gmra.mxu2 %vm38_vm1, %v25_v5  ;;  %277 = vmatmul.msk.f32.vlgmr.msra.gmra.mxu3 %vm38_vm1, %v29_v6 }
   0xc   :  { %106 = vmatpush.msra.mxu0 %v33_v4  ;;  %293 = vmatpush.msra.mxu1 %v33_v4 }
   0xd   :  { %265 = vmatmul.msk.f32.vlgmr.msra.gmra.mxu0 %vm38_vm1, %v17_v7  ;;  %269 = vmatmul.msk.f32.vlgmr.msra.gmra.mxu1 %vm38_vm1, %v21_v8 }
  0x13   :  { %274 = vmatmul.msk.f32.gmra.mxu2 %vm38_vm1, %v26_v9  ;;  %278 = vmatmul.msk.f32.gmra.mxu3 %vm38_vm1, %v30_v10 }
  0x15   :  { %266 = vmatmul.msk.f32.gmra.mxu0 %vm38_vm1, %v18_v11  ;;  %270 = vmatmul.msk.f32.gmra.mxu1 %vm38_vm1, %v22_v12 }
  0x1b   :  { %275 = vmatmul.msk.f32.gmra.mxu2 %vm38_vm1, %v27_v13  ;;  %279 = vmatmul.msk.f32.gmra.mxu3 %vm38_vm1, %v31_v14 }
  0x1d   :  { %267 = vmatmul.msk.f32.gmra.mxu0 %vm38_vm1, %v19_v15  ;;  %271 = vmatmul.msk.f32.gmra.mxu1 %vm38_vm1, %v23_v16 }
  0x23   :  { %276 = vmatmul.msk.f32.gmra.mxu2 %vm38_vm1, %v28_v17  ;;  %280 = vmatmul.msk.f32.gmra.mxu3 %vm38_vm1, %v32_v18 }
  0x25   :  { %268 = vmatmul.msk.f32.gmra.mxu0 %vm38_vm1, %v20_v19  ;;  %272 = vmatmul.msk.f32.gmra.mxu1 %vm38_vm1, %v24_v20 }
  0x8a   :  { %v108_v23 = vpop.f32.mrf.mxu0  ;;  %v120_v24 = vpop.f32.mrf.mxu1 }
  0x8b   :  { %v160_v25 = vmul.f32 %v405_v21, %v108_v23  ;;  %v164_v26 = vmul.f32 %v405_v21, %v120_v24 }
  0x8d   :  { %v180_v27 = vadd.f32 %v410_v22, %v160_v25  ;;  %v184_v28 = vadd.f32 %v410_v22, %v164_v26 }
  0x8e   :  { %v132_v29 = vpop.f32.mrf.mxu2  ;;  %v144_v30 = vpop.f32.mrf.mxu3 }
  0x8f   :  { %vm196_vm2 = vcmp.ge.f32.partialorder %v180_v27, 0.0  ;;  %v212_v31 = vmul.f32 0.01, %v180_v27  ;;  %vm200_vm3 = vcmp.ge.f32.partialorder %v184_v28, 0.0  ;;  %v216_v32 = vmul.f32 0.01, %v184_v28 }
  0x90   :  { %v168_v33 = vmul.f32 %v405_v21, %v132_v29  ;;  %v172_v34 = vmul.f32 %v405_v21, %v144_v30 }
  0x91   :  { %v228_v35 = vsel %vm196_vm2, %v180_v27, %v212_v31  ;;  %v232_v36 = vsel %vm200_vm3, %v184_v28, %v216_v32 }
  0x92   :  { %244 = vst [vmem:[%s496_s4] sm:$0xff] %v228_v35  ;;  %v188_v37 = vadd.f32 %v410_v22, %v168_v33  ;;  %v192_v38 = vadd.f32 %v410_v22, %v172_v34  ;;  %v111_v39 = vpop.f32.mrf.mxu0  ;;  %v123_v40 = vpop.f32.mrf.mxu1 }
  0x93   :  { %248 = vst [vmem:[%s496_s4 + $0x20] sm:$0xff] %v232_v36  ;;  %v161_v41 = vmul.f32 %v405_v21, %v111_v39  ;;  %v165_v42 = vmul.f32 %v405_v21, %v123_v40 }
  0x94   :  { %vm204_vm4 = vcmp.ge.f32.partialorder %v188_v37, 0.0  ;;  %v220_v43 = vmul.f32 0.01, %v188_v37  ;;  %vm208_vm5 = vcmp.ge.f32.partialorder %v192_v38, 0.0  ;;  %v224_v44 = vmul.f32 0.01, %v192_v38 }
  0x95   :  { %v181_v45 = vadd.f32 %v410_v22, %v161_v41  ;;  %v185_v46 = vadd.f32 %v410_v22, %v165_v42 }
  0x96   :  { %v236_v47 = vsel %vm204_vm4, %v188_v37, %v220_v43  ;;  %v240_v48 = vsel %vm208_vm5, %v192_v38, %v224_v44  ;;  %v135_v49 = vpop.f32.mrf.mxu2  ;;  %v147_v50 = vpop.f32.mrf.mxu3 }
  0x97   :  { %252 = vst [vmem:[%s496_s4 + $0x40] sm:$0xff] %v236_v47  ;;  %vm197_vm6 = vcmp.ge.f32.partialorder %v181_v45, 0.0  ;;  %v213_v51 = vmul.f32 0.01, %v181_v45  ;;  %vm201_vm7 = vcmp.ge.f32.partialorder %v185_v46, 0.0  ;;  %v169_v52 = vmul.f32 %v405_v21, %v135_v49 }
  0x98   :  { %256 = vst [vmem:[%s496_s4 + $0x60] sm:$0xff] %v240_v48  ;;  %v217_v53 = vmul.f32 0.01, %v185_v46  ;;  %v173_v54 = vmul.f32 %v405_v21, %v147_v50 }
  0x99   :  { %v229_v55 = vsel %vm197_vm6, %v181_v45, %v213_v51  ;;  %v189_v56 = vadd.f32 %v410_v22, %v169_v52 }
  0x9a   :  { %245 = vst [vmem:[%s496_s4 + $0x8] sm:$0xff] %v229_v55  ;;  %v233_v57 = vsel %vm201_vm7, %v185_v46, %v217_v53  ;;  %v193_v58 = vadd.f32 %v410_v22, %v173_v54  ;;  %v114_v59 = vpop.f32.mrf.mxu0  ;;  %v126_v60 = vpop.f32.mrf.mxu1 }
  0x9b   :  { %249 = vst [vmem:[%s496_s4 + $0x28] sm:$0xff] %v233_v57  ;;  %vm205_vm8 = vcmp.ge.f32.partialorder %v189_v56, 0.0  ;;  %v221_v61 = vmul.f32 0.01, %v189_v56  ;;  %v162_v62 = vmul.f32 %v405_v21, %v114_v59  ;;  %v166_v63 = vmul.f32 %v405_v21, %v126_v60 }
  0x9c   :  { %vm209_vm9 = vcmp.ge.f32.partialorder %v193_v58, 0.0  ;;  %v225_v0 = vmul.f32 0.01, %v193_v58 }
  0x9d   :  { %v237_v1 = vsel %vm205_vm8, %v189_v56, %v221_v61  ;;  %v182_v2 = vadd.f32 %v410_v22, %v162_v62  ;;  %v186_v3 = vadd.f32 %v410_v22, %v166_v63 }
  0x9e   :  { %253 = vst [vmem:[%s496_s4 + $0x48] sm:$0xff] %v237_v1  ;;  %v241_v4 = vsel %vm209_vm9, %v193_v58, %v225_v0  ;;  %v138_v5 = vpop.f32.mrf.mxu2  ;;  %v150_v6 = vpop.f32.mrf.mxu3 }
  0x9f   :  { %257 = vst [vmem:[%s496_s4 + $0x68] sm:$0xff] %v241_v4  ;;  %vm198_vm10 = vcmp.ge.f32.partialorder %v182_v2, 0.0  ;;  %v214_v7 = vmul.f32 0.01, %v182_v2  ;;  %vm202_vm11 = vcmp.ge.f32.partialorder %v186_v3, 0.0  ;;  %v170_v8 = vmul.f32 %v405_v21, %v138_v5 }
  0xa0   :  { %v218_v9 = vmul.f32 0.01, %v186_v3  ;;  %v174_v10 = vmul.f32 %v405_v21, %v150_v6 }
  0xa1   :  { %v230_v11 = vsel %vm198_vm10, %v182_v2, %v214_v7  ;;  %v190_v12 = vadd.f32 %v410_v22, %v170_v8 }
  0xa2   :  { %246 = vst [vmem:[%s496_s4 + $0x10] sm:$0xff] %v230_v11  ;;  %v234_v13 = vsel %vm202_vm11, %v186_v3, %v218_v9  ;;  %v194_v14 = vadd.f32 %v410_v22, %v174_v10  ;;  %v117_v15 = vpop.f32.mrf.mxu0  ;;  %v129_v16 = vpop.f32.mrf.mxu1 }
  0xa3   :  { %250 = vst [vmem:[%s496_s4 + $0x30] sm:$0xff] %v234_v13  ;;  %vm206_vm12 = vcmp.ge.f32.partialorder %v190_v12, 0.0  ;;  %v222_v17 = vmul.f32 0.01, %v190_v12  ;;  %v163_v18 = vmul.f32 %v405_v21, %v117_v15  ;;  %v167_v19 = vmul.f32 %v405_v21, %v129_v16 }
  0xa4   :  { %vm210_vm13 = vcmp.ge.f32.partialorder %v194_v14, 0.0  ;;  %v226_v20 = vmul.f32 0.01, %v194_v14 }
  0xa5   :  { %v238_v23 = vsel %vm206_vm12, %v190_v12, %v222_v17  ;;  %v183_v24 = vadd.f32 %v410_v22, %v163_v18  ;;  %v187_v25 = vadd.f32 %v410_v22, %v167_v19 }
  0xa6   :  { %254 = vst [vmem:[%s496_s4 + $0x50] sm:$0xff] %v238_v23  ;;  %v242_v26 = vsel %vm210_vm13, %v194_v14, %v226_v20  ;;  %v141_v27 = vpop.f32.mrf.mxu2  ;;  %v153_v28 = vpop.f32.mrf.mxu3 }
  0xa7   :  { %258 = vst [vmem:[%s496_s4 + $0x70] sm:$0xff] %v242_v26  ;;  %vm199_vm14 = vcmp.ge.f32.partialorder %v183_v24, 0.0  ;;  %v215_v29 = vmul.f32 0.01, %v183_v24  ;;  %vm203_vm15 = vcmp.ge.f32.partialorder %v187_v25, 0.0  ;;  %v171_v30 = vmul.f32 %v405_v21, %v141_v27 }
  0xa8   :  { %v219_v31 = vmul.f32 0.01, %v187_v25  ;;  %v175_v32 = vmul.f32 %v405_v21, %v153_v28 }
  0xa9   :  { %v231_v33 = vsel %vm199_vm14, %v183_v24, %v215_v29  ;;  %v191_v34 = vadd.f32 %v410_v22, %v171_v30 }
  0xaa   :  { %247 = vst [vmem:[%s496_s4 + $0x18] sm:$0xff] %v231_v33  ;;  %v235_v35 = vsel %vm203_vm15, %v187_v25, %v219_v31  ;;  %v195_v36 = vadd.f32 %v410_v22, %v175_v32 }
  0xab   :  { %251 = vst [vmem:[%s496_s4 + $0x38] sm:$0xff] %v235_v35  ;;  %vm207_vm0 = vcmp.ge.f32.partialorder %v191_v34, 0.0  ;;  %v223_v37 = vmul.f32 0.01, %v191_v34 }
  0xac   :  { %vm211_vm1 = vcmp.ge.f32.partialorder %v195_v36, 0.0  ;;  %v227_v38 = vmul.f32 0.01, %v195_v36 }
  0xad   :  { %v239_v39 = vsel %vm207_vm0, %v191_v34, %v223_v37 }
  0xae   :  { %255 = vst [vmem:[%s496_s4 + $0x58] sm:$0xff] %v239_v39  ;;  %v243_v21 = vsel %vm211_vm1, %v195_v36, %v227_v38 }
  0xaf   :  { %259 = vst [vmem:[%s496_s4 + $0x78] sm:$0xff] %v243_v21 }

// kernel: conv_block_forward.2
= control target key start
LH: loop header
LB: loop body
LE: loop exit
PB: predicated region body
PF: predicated region fallthrough
CT: control target
= control target key end

     0   :  { %vm83_vm0 = vcmask 1043456   ;;  %vm34_vm1 = vcmask 293888   ;;  %s444_s1 = inlined_call_operand.vmem [shape: f32[36,128], index: 1, kind: input, shape index: {}]   ;;  %s445_s0 = inlined_call_operand.vmem [shape: f32[128,36], index: 0, kind: input, shape index: {}]   ;;  %s446_s2 = inlined_call_operand.vmem [shape: f32[1,8,128], index: 2, kind: output, shape index: {0}]   ;;  %s447_s3 = inlined_call_operand.vmem [shape: f32[1,8,128], index: 3, kind: output, shape index: {1}]  }
   0x1   :  { %v33_v0 = vld [vmem:[%s444_s1 + $0x20] sm:$0xf]  ;;  %v32_v1 = vld [vmem:[%s444_s1 + $0x18] sm:$0xff]  ;;  %v31_v2 = vld [vmem:[%s444_s1 + $0x10] sm:$0xff] }
   0x2   :  { %307 = vmatpush.msk.msra.mxu0 %vm83_vm0, %v33_v0  ;;  %324 = vmatpush.msk.msra.mxu1 %vm83_vm0, %v33_v0  ;;  %v30_v3 = vld [vmem:[%s444_s1 + $0x8] sm:$0xff]  ;;  %v29_v4 = vld [vmem:[%s444_s1] sm:$0xff]  ;;  %v15_v13 = vld [vmem:[%s445_s0 + $0x10] sm:$0xff] }
   0x3   :  { %325 = vmatpush.msk.msra.mxu2 %vm83_vm0, %v33_v0  ;;  %326 = vmatpush.msk.msra.mxu3 %vm83_vm0, %v33_v0  ;;  %v13_v5 = vld [vmem:[%s445_s0] sm:$0xff]  ;;  %v14_v9 = vld [vmem:[%s445_s0 + $0x8] sm:$0xff]  ;;  %v19_v14 = vld [vmem:[%s445_s0 + $0x30] sm:$0xff] }
   0x4   :  { %99 = vmatpush.msra.mxu0 %v32_v1  ;;  %327 = vmatpush.msra.mxu1 %v32_v1  ;;  %v17_v6 = vld [vmem:[%s445_s0 + $0x20] sm:$0xff]  ;;  %v18_v10 = vld [vmem:[%s445_s0 + $0x28] sm:$0xff]  ;;  %v23_v15 = vld [vmem:[%s445_s0 + $0x50] sm:$0xff] }
   0x5   :  { %328 = vmatpush.msra.mxu2 %v32_v1  ;;  %329 = vmatpush.msra.mxu3 %v32_v1  ;;  %v21_v7 = vld [vmem:[%s445_s0 + $0x40] sm:$0xff]  ;;  %v22_v11 = vld [vmem:[%s445_s0 + $0x48] sm:$0xff]  ;;  %v27_v16 = vld [vmem:[%s445_s0 + $0x70] sm:$0xff] }
   0x6   :  { %100 = vmatpush.msra.mxu0 %v31_v2  ;;  %330 = vmatpush.msra.mxu1 %v31_v2  ;;  %v25_v8 = vld [vmem:[%s445_s0 + $0x60] sm:$0xff]  ;;  %v26_v12 = vld [vmem:[%s445_s0 + $0x68] sm:$0xff]  ;;  %v16_v17 = vld [vmem:[%s445_s0 + $0x18] sm:$0xff] }
   0x7   :  { %331 = vmatpush.msra.mxu2 %v31_v2  ;;  %332 = vmatpush.msra.mxu3 %v31_v2  ;;  %v20_v18 = vld [vmem:[%s445_s0 + $0x38] sm:$0xff] }
   0x8   :  { %101 = vmatpush.msra.mxu0 %v30_v3  ;;  %333 = vmatpush.msra.mxu1 %v30_v3  ;;  %v24_v19 = vld [vmem:[%s445_s0 + $0x58] sm:$0xff] }
   0x9   :  { %334 = vmatpush.msra.mxu2 %v30_v3  ;;  %335 = vmatpush.msra.mxu3 %v30_v3  ;;  %v28_v20 = vld [vmem:[%s445_s0 + $0x78] sm:$0xff] }
   0xa   :  { %102 = vmatpush.msra.mxu0 %v29_v4  ;;  %336 = vmatpush.msra.mxu1 %v29_v4 }
   0xb   :  { %308 = vmatmul.msk.f32.vlgmr.msra.gmra.mxu0 %vm34_vm1, %v13_v5  ;;  %312 = vmatmul.msk.f32.vlgmr.msra.gmra.mxu1 %vm34_vm1, %v17_v6 }
   0xc   :  { %337 = vmatpush.msra.mxu2 %v29_v4  ;;  %338 = vmatpush.msra.mxu3 %v29_v4 }
   0xd   :  { %316 = vmatmul.msk.f32.vlgmr.msra.gmra.mxu2 %vm34_vm1, %v21_v7  ;;  %320 = vmatmul.msk.f32.vlgmr.msra.gmra.mxu3 %vm34_vm1, %v25_v8 }
  0x13   :  { %309 = vmatmul.msk.f32.gmra.mxu0 %vm34_vm1, %v14_v9  ;;  %313 = vmatmul.msk.f32.gmra.mxu1 %vm34_vm1, %v18_v10 }
  0x15   :  { %317 = vmatmul.msk.f32.gmra.mxu2 %vm34_vm1, %v22_v11  ;;  %321 = vmatmul.msk.f32.gmra.mxu3 %vm34_vm1, %v26_v12 }
  0x1b   :  { %310 = vmatmul.msk.f32.gmra.mxu0 %vm34_vm1, %v15_v13  ;;  %314 = vmatmul.msk.f32.gmra.mxu1 %vm34_vm1, %v19_v14 }
  0x1d   :  { %318 = vmatmul.msk.f32.gmra.mxu2 %vm34_vm1, %v23_v15  ;;  %322 = vmatmul.msk.f32.gmra.mxu3 %vm34_vm1, %v27_v16 }
  0x23   :  { %311 = vmatmul.msk.f32.gmra.mxu0 %vm34_vm1, %v16_v17  ;;  %315 = vmatmul.msk.f32.gmra.mxu1 %vm34_vm1, %v20_v18 }
  0x25   :  { %319 = vmatmul.msk.f32.gmra.mxu2 %vm34_vm1, %v24_v19  ;;  %323 = vmatmul.msk.f32.gmra.mxu3 %vm34_vm1, %v28_v20 }
  0x88   :  { %v104_v21 = vpop.f32.mrf.mxu0  ;;  %v116_v22 = vpop.f32.mrf.mxu1 }
  0x89   :  { %v267_v31 = vmul.f32 %v104_v21, %v104_v21  ;;  %v271_v42 = vmul.f32 %v116_v22, %v116_v22 }
  0x90   :  { %v107_v23 = vpop.f32.mrf.mxu0  ;;  %v119_v24 = vpop.f32.mrf.mxu1 }
  0x91   :  { %v128_v25 = vpop.f32.mrf.mxu2  ;;  %v140_v26 = vpop.f32.mrf.mxu3  ;;  %v268_v30 = vmul.f32 %v107_v23, %v107_v23  ;;  %v251_v32 = vadd.f32 %v107_v23, %v104_v21  ;;  %v272_v46 = vmul.f32 %v119_v24, %v119_v24 }
  0x92   :  { %v275_v56 = vmul.f32 %v128_v25, %v128_v25  ;;  %v279_v5 = vmul.f32 %v140_v26, %v140_v26 }
  0x93   :  { %v283_v34 = vadd.f32 %v268_v30, %v267_v31 }
  0x98   :  { %v110_v27 = vpop.f32.mrf.mxu0  ;;  %v122_v29 = vpop.f32.mrf.mxu1 }
  0x99   :  { %v131_v28 = vpop.f32.mrf.mxu2  ;;  %v269_v33 = vmul.f32 %v110_v27, %v110_v27  ;;  %v252_v35 = vadd.f32 %v251_v32, %v110_v27  ;;  %v143_v37 = vpop.f32.mrf.mxu3  ;;  %v273_v50 = vmul.f32 %v122_v29, %v122_v29 }
  0x9a   :  { %v276_v60 = vmul.f32 %v131_v28, %v131_v28  ;;  %v280_v9 = vmul.f32 %v143_v37, %v143_v37 }
  0x9b   :  { %v284_v38 = vadd.f32 %v283_v34, %v269_v33 }
  0xa0   :  { %v113_v36 = vpop.f32.mrf.mxu0  ;;  %v125_v45 = vpop.f32.mrf.mxu1 }
  0xa1   :  { %v253_v39 = vadd.f32 %v252_v35, %v113_v36  ;;  %v270_v40 = vmul.f32 %v113_v36, %v113_v36  ;;  %v134_v41 = vpop.f32.mrf.mxu2  ;;  %v274_v52 = vmul.f32 %v125_v45, %v125_v45  ;;  %v146_v55 = vpop.f32.mrf.mxu3 }
  0xa2   :  { %v277_v0 = vmul.f32 %v134_v41, %v134_v41  ;;  %v281_v13 = vmul.f32 %v146_v55, %v146_v55 }
  0xa3   :  { %v254_v43 = vadd.f32 %v253_v39, %v116_v22  ;;  %v285_v44 = vadd.f32 %v284_v38, %v270_v40 }
  0xa5   :  { %v286_v47 = vadd.f32 %v285_v44, %v271_v42  ;;  %v255_v48 = vadd.f32 %v254_v43, %v119_v24 }
  0xa7   :  { %v256_v49 = vadd.f32 %v255_v48, %v122_v29  ;;  %v287_v51 = vadd.f32 %v286_v47, %v272_v46 }
  0xa9   :  { %v288_v53 = vadd.f32 %v287_v51, %v273_v50  ;;  %v257_v54 = vadd.f32 %v256_v49, %v125_v45  ;;  %v137_v59 = vpop.f32.mrf.mxu2  ;;  %v149_v8 = vpop.f32.mrf.mxu3 }
  0xaa   :  { %v278_v2 = vmul.f32 %v137_v59, %v137_v59  ;;  %v282_v15 = vmul.f32 %v149_v8, %v149_v8 }
  0xab   :  { %v258_v57 = vadd.f32 %v257_v54, %v128_v25  ;;  %v289_v58 = vadd.f32 %v288_v53, %v274_v52 }
  0xad   :  { %v290_v61 = vadd.f32 %v289_v58, %v275_v56  ;;  %v259_v62 = vadd.f32 %v258_v57, %v131_v28 }
  0xaf   :  { %v260_v63 = vadd.f32 %v259_v62, %v134_v41  ;;  %v291_v1 = vadd.f32 %v290_v61, %v276_v60 }
  0xb1   :  { %v292_v3 = vadd.f32 %v291_v1, %v277_v0  ;;  %v261_v4 = vadd.f32 %v260_v63, %v137_v59 }
  0xb3   :  { %v262_v6 = vadd.f32 %v261_v4, %v140_v26  ;;  %v293_v7 = vadd.f32 %v292_v3, %v278_v2 }
  0xb5   :  { %v294_v10 = vadd.f32 %v293_v7, %v279_v5  ;;  %v263_v11 = vadd.f32 %v262_v6, %v143_v37 }
  0xb7   :  { %v264_v12 = vadd.f32 %v263_v11, %v146_v55  ;;  %v295_v14 = vadd.f32 %v294_v10, %v280_v9 }
  0xb9   :  { %v296_v16 = vadd.f32 %v295_v14, %v281_v13  ;;  %v265_v17 = vadd.f32 %v264_v12, %v149_v8 }
  0xbb   :  { %266 = vst [vmem:[%s446_s2] sm:$0xff] %v265_v17  ;;  %v297_v18 = vadd.f32 %v296_v16, %v282_v15 }
  0xbd   :  { %298 = vst [vmem:[%s447_s3] sm:$0xff] %v297_v18 }

</bundles_post_ra>
